<compile_context>
chip_gen: v5e
topology: v5e:2x2
jax: 0.10.0
libtpu: 0.0.40
codegen_flags: <defaults>
</compile_context>

<pallas_src>
import functools

import jax
import jax.numpy as jnp
from jax.experimental import pallas as pl
from jax.experimental.pallas import tpu as pltpu

_LANES = 128   # one vreg lane row; hidden1 (128), hidden2 (64), action_dim all fit


def _round_up(x, m):
    return (x + m - 1) // m * m


def _cdiv(a, b):
    return -(-a // b)


# --------------------------------------------------------------------------- #
# Kernel
# --------------------------------------------------------------------------- #
def _actor_kernel(x_ref, w_ref, b_ref, o_ref, *, s8, sub, n_sub):
    # Resident packed weights / biases; static slices of VMEM refs are free.
    w1 = w_ref[0:s8, :]                    # (S8, 128)   cols >= hidden1 are zero
    w2 = w_ref[s8:s8 + _LANES, :]          # (128, 128)  cols >= hidden2 are zero
    w3 = w_ref[s8 + _LANES:s8 + 2 * _LANES, :]   # (128, 128) rows>=hidden2 / cols>=act zero
    b1 = b_ref[0:1, :]
    b2 = b_ref[1:2, :]
    b3 = b_ref[2:3, :]

    def body(i, carry):
        r = pl.multiple_of(i * sub, 8)
        x = x_ref[pl.ds(r, sub), :]
        # f32 matmuls with f32 accumulation; elementwise math stays f32
        # (v5e VPU/EUP have no bf16 path, and neither unit is saturated here).
        h1 = jnp.maximum(jnp.dot(x, w1, preferred_element_type=jnp.float32) + b1, 0.0)
        h2 = jnp.maximum(jnp.dot(h1, w2, preferred_element_type=jnp.float32) + b2, 0.0)
        y = jnp.tanh(jnp.dot(h2, w3, preferred_element_type=jnp.float32) + b3)
        o_ref[pl.ds(r, sub), :] = y.astype(o_ref.dtype)   # unmasked 128-lane store
        return carry

    jax.lax.fori_loop(0, n_sub, body, None, unroll=True)


# --------------------------------------------------------------------------- #
# One-time parameter packing (NOT in the per-call path)
# --------------------------------------------------------------------------- #
def pack_actor_params(params):
    """Pack the three layers into one weight block and one bias block."""
    w1, b1 = params["w1"], params["b1"]
    w2, b2 = params["w2"], params["b2"]
    w3, b3 = params["w3"], params["b3"]
    state_dim, h1 = w1.shape
    h2 = w2.shape[1]
    action_dim = w3.shape[1]
    assert w2.shape[0] == h1 and w3.shape[0] == h2
    assert h1 <= _LANES and h2 <= _LANES and action_dim <= _LANES
    s8 = _round_up(state_dim, 8)

    wp = jnp.zeros((s8 + 2 * _LANES, _LANES), jnp.float32)
    wp = wp.at[:state_dim, :h1].set(w1.astype(jnp.float32))
    wp = wp.at[s8:s8 + h1, :h2].set(w2.astype(jnp.float32))
    wp = wp.at[s8 + _LANES:s8 + _LANES + h2, :action_dim].set(w3.astype(jnp.float32))

    bpk = jnp.zeros((8, _LANES), jnp.float32)           # sublane-aligned bias block
    bpk = bpk.at[0, :h1].set(b1.reshape(-1).astype(jnp.float32))
    bpk = bpk.at[1, :h2].set(b2.reshape(-1).astype(jnp.float32))
    bpk = bpk.at[2, :action_dim].set(b3.reshape(-1).astype(jnp.float32))
    return wp, bpk


# --------------------------------------------------------------------------- #
# Forward wrapper
# --------------------------------------------------------------------------- #
@functools.partial(
    jax.jit, static_argnames=("action_dim", "tile_b", "sub_rows", "out_dtype"))
def actor_forward(state, wp, bpk, *, action_dim, tile_b=1024, sub_rows=256,
                  out_dtype=jnp.float32):
    """state: (B, state_dim) f32.  wp/bpk: packed blocks from pack_actor_params."""
    B, state_dim = state.shape
    s8 = wp.shape[0] - 2 * _LANES
    assert s8 == _round_up(state_dim, 8)

    xs = state.astype(jnp.float32)
    if state_dim != s8:                       # lane-pad K only if not 8-aligned
        xs = jnp.pad(xs, ((0, 0), (0, s8 - state_dim)))

    # ---- batch tiling (static Python math) --------------------------------
    b8 = _round_up(max(B, 1), 8)
    n_chunks = max(1, _cdiv(b8, sub_rows))            # ~sub_rows-row sub-chunks
    max_sub_per_tile = max(1, tile_b // sub_rows)
    # >=2 grid steps when possible -> both TensorCores on v7x get work.
    n_steps = max(_cdiv(n_chunks, max_sub_per_tile), 2 if n_chunks >= 2 else 1)
    n_sub = _cdiv(n_chunks, n_steps)
    n_chunks = n_steps * n_sub
    sub = _round_up(_cdiv(b8, n_chunks), 8)            # minimal padding per chunk
    tb = n_sub * sub
    b_pad = n_steps * tb
    if b_pad != B:
        xs = jnp.pad(xs, ((0, b_pad - B), (0, 0)))

    kernel = functools.partial(_actor_kernel, s8=s8, sub=sub, n_sub=n_sub)

    flops = 2 * b_pad * (s8 * _LANES + _LANES * _LANES + _LANES * _LANES)
    bytes_accessed = (xs.size * 4 + wp.size * 4 + bpk.size * 4
                      + b_pad * _LANES * jnp.dtype(out_dtype).itemsize)

    out = pl.pallas_call(
        kernel,
        out_shape=jax.ShapeDtypeStruct((b_pad, _LANES), out_dtype),
        grid_spec=pl.GridSpec(
            grid=(n_steps,),
            in_specs=[
                pl.BlockSpec((tb, s8), lambda i: (i, 0)),     # x batch tile
                pl.BlockSpec(wp.shape, lambda i: (0, 0)),     # packed weights (resident)
                pl.BlockSpec(bpk.shape, lambda i: (0, 0)),    # packed biases  (resident)
            ],
            out_specs=pl.BlockSpec((tb, _LANES), lambda i: (i, 0)),
        ),
        compiler_params=pltpu.CompilerParams(dimension_semantics=("parallel",)),
        cost_estimate=pl.CostEstimate(flops=flops,
                                      transcendentals=b_pad * _LANES,
                                      bytes_accessed=bytes_accessed),
    )(xs, wp, bpk)

    # Strip batch padding and the lane padding of the action dimension.
    return out[:B, :action_dim]


# --------------------------------------------------------------------------- #
# Init + reference
# --------------------------------------------------------------------------- #
def init_actor_params(key, state_dim, action_dim):
    """Matches nn.Linear's U(-1/sqrt(fan_in), 1/sqrt(fan_in)) init."""
    def linear(k, fan_in, fan_out):
        kw, kb = jax.random.split(k)
        bound = 1.0 / jnp.sqrt(float(fan_in))
        w = jax.random.uniform(kw, (fan_in, fan_out), jnp.float32, -bound, bound)
        b = jax.random.uniform(kb, (1, fan_out), jnp.float32, -bound, bound)
        return w, b

    k1, k2, k3 = jax.random.split(key, 3)
    w1, b1 = linear(k1, state_dim, 128)
    w2, b2 = linear(k2, 128, 64)
    w3, b3 = linear(k3, 64, action_dim)
    return {"w1": w1, "b1": b1, "w2": w2, "b2": b2, "w3": w3, "b3": b3}


def actor_reference(state, params):
    hp = jax.lax.Precision.HIGHEST
    h1 = jnp.maximum(jnp.dot(state, params["w1"], precision=hp) + params["b1"], 0.0)
    h2 = jnp.maximum(jnp.dot(h1, params["w2"], precision=hp) + params["b2"], 0.0)
    return jnp.tanh(jnp.dot(h2, params["w3"], precision=hp) + params["b3"])


# --------------------------------------------------------------------------- #
if __name__ == "__main__":
    key = jax.random.PRNGKey(0)
    k_param, k_s1, k_s2 = jax.random.split(key, 3)

    state_dim, action_dim = 32, 4
    params = init_actor_params(k_param, state_dim, action_dim)
    wp, bpk = pack_actor_params(params)          # one-time packing

    # Small batch: single grid step, single sub-chunk.
    batch1 = 8
    s1 = jax.random.normal(k_s1, (batch1, state_dim), jnp.float32)
    o1 = jax.block_until_ready(actor_forward(s1, wp, bpk, action_dim=action_dim))
    r1 = actor_reference(s1, params)
    assert o1.shape == (batch1, action_dim), o1.shape
    assert jnp.allclose(o1, r1, atol=2e-2), float(jnp.max(jnp.abs(o1 - r1)))

    # Larger batch: 2 grid steps (exercises megacore split + minimal padding).
    batch2 = 384
    s2 = jax.random.normal(k_s2, (batch2, state_dim), jnp.float32)
    o2 = jax.block_until_ready(actor_forward(s2, wp, bpk, action_dim=action_dim))
    r2 = actor_reference(s2, params)
    assert o2.shape == (batch2, action_dim), o2.shape
    assert jnp.allclose(o2, r2, atol=2e-2), float(jnp.max(jnp.abs(o2 - r2)))

    print("KERNEL_OK")
</pallas_src>

<mosaic_0001>
module attributes {stable_mosaic.version = 11 : i64} {
  func.func @_actor_kernel(%arg0: i32, %arg1: memref<8x32xf32, #tpu.memory_space<vmem>>, %arg2: memref<288x128xf32, #tpu.memory_space<vmem>>, %arg3: memref<8x128xf32, #tpu.memory_space<vmem>>, %arg4: memref<8x128xf32, #tpu.memory_space<vmem>>) attributes {dimension_semantics = [#tpu.dimension_semantics<parallel>], iteration_bounds = array<i64: 1>, scalar_prefetch = 0 : i64, scratch_operands = 0 : i64, tpu.core_type = #tpu.core_type<tc>, window_params = [{transform_indices = @transform_0, window_bounds = array<i64: 8, 32>}, {pipeline_mode = #tpu.pipeline_mode<synchronous>, transform_indices = @transform_1, window_bounds = array<i64: 288, 128>}, {pipeline_mode = #tpu.pipeline_mode<synchronous>, transform_indices = @transform_2, window_bounds = array<i64: 8, 128>}, {transform_indices = @transform_3, window_bounds = array<i64: 8, 128>}]} {
    %c0 = arith.constant 0 : index
    %c0_0 = arith.constant 0 : index
    %0 = vector.load %arg2[%c0, %c0_0] : memref<288x128xf32, #tpu.memory_space<vmem>>, vector<32x128xf32>
    %c32 = arith.constant 32 : index
    %c0_1 = arith.constant 0 : index
    %1 = vector.load %arg2[%c32, %c0_1] : memref<288x128xf32, #tpu.memory_space<vmem>>, vector<128x128xf32>
    %c160 = arith.constant 160 : index
    %c0_2 = arith.constant 0 : index
    %2 = vector.load %arg2[%c160, %c0_2] : memref<288x128xf32, #tpu.memory_space<vmem>>, vector<128x128xf32>
    %c0_3 = arith.constant 0 : index
    %c0_4 = arith.constant 0 : index
    %3 = vector.load %arg3[%c0_3, %c0_4] : memref<8x128xf32, #tpu.memory_space<vmem>>, vector<1x128xf32>
    %c1 = arith.constant 1 : index
    %c0_5 = arith.constant 0 : index
    %4 = vector.load %arg3[%c1, %c0_5] : memref<8x128xf32, #tpu.memory_space<vmem>>, vector<1x128xf32>
    %c2 = arith.constant 2 : index
    %c0_6 = arith.constant 0 : index
    %5 = vector.load %arg3[%c2, %c0_6] : memref<8x128xf32, #tpu.memory_space<vmem>>, vector<1x128xf32>
    %c0_i32 = arith.constant 0 : i32
    %c8_i32 = arith.constant 8 : i32
    %6 = arith.muli %c0_i32, %c8_i32 : i32
    %7 = tpu.assume_multiple %6, 8 : i32
    %8 = arith.index_cast %7 : i32 to index
    %c0_7 = arith.constant 0 : index
    %9 = vector.load %arg1[%8, %c0_7] : memref<8x32xf32, #tpu.memory_space<vmem>>, vector<8x32xf32>
    %cst = arith.constant dense<0.000000e+00> : vector<8x128xf32>
    %10 = tpu.matmul %9, %0, %cst {dimension_numbers = #tpu.dot_dimension_numbers<[1], [0], [0], [1], [0, 0, 1, 1], [], []>} : vector<8x32xf32>, vector<32x128xf32>, vector<8x128xf32> -> vector<8x128xf32>
    %11 = vector.broadcast %3 : vector<1x128xf32> to vector<8x128xf32>
    %12 = arith.addf %10, %11 : vector<8x128xf32>
    %cst_8 = arith.constant 0.000000e+00 : f32
    %13 = vector.broadcast %cst_8 : f32 to vector<8x128xf32>
    %14 = arith.maximumf %12, %13 : vector<8x128xf32>
    %cst_9 = arith.constant dense<0.000000e+00> : vector<8x128xf32>
    %15 = tpu.matmul %14, %1, %cst_9 {dimension_numbers = #tpu.dot_dimension_numbers<[1], [0], [0], [1], [0, 0, 1, 1], [], []>} : vector<8x128xf32>, vector<128x128xf32>, vector<8x128xf32> -> vector<8x128xf32>
    %16 = vector.broadcast %4 : vector<1x128xf32> to vector<8x128xf32>
    %17 = arith.addf %15, %16 : vector<8x128xf32>
    %cst_10 = arith.constant 0.000000e+00 : f32
    %18 = vector.broadcast %cst_10 : f32 to vector<8x128xf32>
    %19 = arith.maximumf %17, %18 : vector<8x128xf32>
    %cst_11 = arith.constant dense<0.000000e+00> : vector<8x128xf32>
    %20 = tpu.matmul %19, %2, %cst_11 {dimension_numbers = #tpu.dot_dimension_numbers<[1], [0], [0], [1], [0, 0, 1, 1], [], []>} : vector<8x128xf32>, vector<128x128xf32>, vector<8x128xf32> -> vector<8x128xf32>
    %21 = vector.broadcast %5 : vector<1x128xf32> to vector<8x128xf32>
    %22 = arith.addf %20, %21 : vector<8x128xf32>
    %23 = math.tanh %22 : vector<8x128xf32>
    %24 = arith.index_cast %7 : i32 to index
    %c0_12 = arith.constant 0 : index
    %25 = vector.load %arg4[%24, %c0_12] : memref<8x128xf32, #tpu.memory_space<vmem>>, vector<8x128xf32>
    tpu.vector_store %arg4[%24, %c0_12], %23 {strides = array<i32>} : memref<8x128xf32, #tpu.memory_space<vmem>>, vector<8x128xf32>,
    %c1_i32 = arith.constant 1 : i32
    return
  }
  func.func @transform_0(%arg0: i32) -> (i32, i32) {
    %c0_i32 = arith.constant 0 : i32
    %c0_i32_0 = arith.constant 0 : i32
    return %arg0, %c0_i32 : i32, i32
  }
  func.func @transform_1(%arg0: i32) -> (i32, i32) {
    %c0_i32 = arith.constant 0 : i32
    %c0_i32_0 = arith.constant 0 : i32
    %c0_i32_1 = arith.constant 0 : i32
    return %c0_i32, %c0_i32_0 : i32, i32
  }
  func.func @transform_2(%arg0: i32) -> (i32, i32) {
    %c0_i32 = arith.constant 0 : i32
    %c0_i32_0 = arith.constant 0 : i32
    %c0_i32_1 = arith.constant 0 : i32
    return %c0_i32, %c0_i32_0 : i32, i32
  }
  func.func @transform_3(%arg0: i32) -> (i32, i32) {
    %c0_i32 = arith.constant 0 : i32
    %c0_i32_0 = arith.constant 0 : i32
    return %arg0, %c0_i32 : i32, i32
  }
}

</mosaic_0001>

<bundles_post_ra>
// kernel: actor_forward.1
= control target key start
LH: loop header
LB: loop body
LE: loop exit
PB: predicated region body
PF: predicated region fallthrough
CT: control target
= control target key end

     0   :  { %8 = vsyncpa [#allocation3], 0  ;;  %s298_s0 = inlined_call_operand.hbm [shape: f32[8,32], index: 0, kind: input, shape index: {}]   ;;  %s299_s1 = inlined_call_operand.hbm [shape: f32[288,128], index: 1, kind: input, shape index: {}]   ;;  %s300_s2 = inlined_call_operand.hbm [shape: f32[8,128], index: 2, kind: input, shape index: {}]   ;;  %s301_s3 = inlined_call_operand.vmem [shape: f32[8,128], index: 3, kind: output, shape index: {}]  }
   0x1   :  { %9 = vsyncpa [#allocation5], 0  ;;  %s25_s14 = sshll.u32 %s299_s1, 4  ;;  %s261_s15 = smov [#allocation4]   ;;  %s26_s14 = int_to_ptr.hbm [resolvable:$true] %s25_s14 }
   0x2   :  { %s27_s16 = sshll.u32 %s261_s15, 4  ;;  %s15_s19 = sshll.u32 %s298_s0, 4  ;;  %s28_s16 = int_to_ptr.vmem [resolvable:$true] %s27_s16  ;;  %s16_s19 = int_to_ptr.hbm [resolvable:$true] %s15_s19 }
   0x3   :  { %s262_s20 = smov 128   ;;  %s263_s21 = smov 8  }
   0x4   :  { %33 = dma.hbm_to_vmem [thread:$0]  %s26_s14, 4608, %s28_s16, [#allocation5], %s262_s20, %s262_s20, %s263_s21  }
   0x5   :  { %s264_s22 = smov [#allocation2]   ;;  %s39_s26 = sshll.u32 %s300_s2, 4  ;;  %s40_s26 = int_to_ptr.hbm [resolvable:$true] %s39_s26 }
   0x6   :  { %s17_s23 = sshll.u32 %s264_s22, 4  ;;  %s265_s1 = smov [#allocation6]   ;;  %s18_s23 = int_to_ptr.vmem [resolvable:$true] %s17_s23 }
   0x7   :  { %20 = dma.hbm_to_vmem [thread:$0]  %s16_s19, 128, %s18_s23, [#allocation3]  }
   0x8   :  { %s41_s27 = sshll.u32 %s265_s1, 4  ;;  %s42_s27 = int_to_ptr.vmem [resolvable:$true] %s41_s27 }
   0x9   :  { %44 = dma.hbm_to_vmem [thread:$0]  %s40_s26, 128, %s42_s27, [#allocation5]  }
   0xa   :  { %257 = dma.done.wait [#allocation3], 128  }
   0xb   :  { %258 = vsyncadd [#allocation3], 4294967168 }
   0xc   :  { %259 = dma.done.wait [#allocation5], 4736  }
   0xd   :  { %260 = vsyncadd [#allocation5], 4294962560  ;;  %v60_v0 = vld [vmem:[#allocation4 + $0x18] sm:$0xff]  ;;  %v59_v1 = vld [vmem:[#allocation4 + $0x10] sm:$0xff]  ;;  %vm98_vm0 = vcmask 261120  }
   0xe   :  { %114 = vmatpush.msra.mxu0 %v60_v0  ;;  %v76_v2 = vld [vmem:[#allocation4 + $0x98] sm:$0xff]  ;;  %v58_v3 = vld [vmem:[#allocation4 + $0x8] sm:$0xff]  ;;  %v75_v4 = vld [vmem:[#allocation4 + $0x90] sm:$0xff] }
   0xf   :  { %124 = vmatpush.msra.mxu1 %v76_v2  ;;  %v74_v5 = vld [vmem:[#allocation4 + $0x88] sm:$0xff]  ;;  %v57_v6 = vld [vmem:[#allocation4] sm:$0xff]  ;;  %v96_v7 = vld [vmem:[#allocation2] sm:$0xff] }
  0x10   :  { %115 = vmatpush.msra.mxu0 %v59_v1  ;;  %v73_v8 = vld [vmem:[#allocation4 + $0x80] sm:$0xff]  ;;  %v72_v9 = vld [vmem:[#allocation4 + $0x78] sm:$0xff]  ;;  %v71_v10 = vld [vmem:[#allocation4 + $0x70] sm:$0xff] }
  0x11   :  { %125 = vmatpush.msra.mxu1 %v75_v4  ;;  %v70_v11 = vld [vmem:[#allocation4 + $0x68] sm:$0xff]  ;;  %v69_v12 = vld [vmem:[#allocation4 + $0x60] sm:$0xff]  ;;  %v68_v13 = vld [vmem:[#allocation4 + $0x58] sm:$0xff] }
  0x12   :  { %116 = vmatpush.msra.mxu0 %v58_v3  ;;  %v67_v14 = vld [vmem:[#allocation4 + $0x50] sm:$0xff]  ;;  %v66_v15 = vld [vmem:[#allocation4 + $0x48] sm:$0xff]  ;;  %v65_v16 = vld [vmem:[#allocation4 + $0x40] sm:$0xff] }
  0x13   :  { %126 = vmatpush.msra.mxu1 %v74_v5  ;;  %v64_v17 = vld [vmem:[#allocation4 + $0x38] sm:$0xff]  ;;  %v63_v18 = vld [vmem:[#allocation4 + $0x30] sm:$0xff]  ;;  %v62_v19 = vld [vmem:[#allocation4 + $0x28] sm:$0xff] }
  0x14   :  { %117 = vmatpush.msra.mxu0 %v57_v6  ;;  %v61_v20 = vld [vmem:[#allocation4 + $0x20] sm:$0xff]  ;;  %v92_v21 = vld [vmem:[#allocation4 + $0x118] sm:$0xff]  ;;  %v91_v22 = vld [vmem:[#allocation4 + $0x110] sm:$0xff] }
  0x15   :  { %174 = vmatmul.msk.f32.vlgmr.msra.gmra.mxu0 %vm98_vm0, %v96_v7  ;;  %127 = vmatpush.msra.mxu1 %v73_v8  ;;  %v90_v23 = vld [vmem:[#allocation4 + $0x108] sm:$0xff]  ;;  %v89_v24 = vld [vmem:[#allocation4 + $0x100] sm:$0xff]  ;;  %v88_v25 = vld [vmem:[#allocation4 + $0xf8] sm:$0xff] }
  0x16   :  { %146 = vmatpush.msra.mxu2 %v92_v21  ;;  %v87_v26 = vld [vmem:[#allocation4 + $0xf0] sm:$0xff]  ;;  %v86_v27 = vld [vmem:[#allocation4 + $0xe8] sm:$0xff]  ;;  %v85_v28 = vld [vmem:[#allocation4 + $0xe0] sm:$0xff] }
  0x17   :  { %128 = vmatpush.msra.mxu1 %v72_v9  ;;  %v84_v29 = vld [vmem:[#allocation4 + $0xd8] sm:$0xff]  ;;  %v83_v30 = vld [vmem:[#allocation4 + $0xd0] sm:$0xff]  ;;  %v82_v31 = vld [vmem:[#allocation4 + $0xc8] sm:$0xff] }
  0x18   :  { %147 = vmatpush.msra.mxu2 %v91_v22  ;;  %v81_v32 = vld [vmem:[#allocation4 + $0xc0] sm:$0xff]  ;;  %v80_v33 = vld [vmem:[#allocation4 + $0xb8] sm:$0xff]  ;;  %v79_v38 = vld [vmem:[#allocation4 + $0xb0] sm:$0xff] }
  0x19   :  { %129 = vmatpush.msra.mxu1 %v71_v10  ;;  %v180_v34 = vld [vmem:[#allocation6] ss:$0 sm:$0xff]  ;;  %v78_v39 = vld [vmem:[#allocation4 + $0xa8] sm:$0xff]  ;;  %v181_v41 = vld [vmem:[#allocation6 + $0x1] ss:$0 sm:$0xff] }
  0x1a   :  { %148 = vmatpush.msra.mxu2 %v90_v23  ;;  %v77_v40 = vld [vmem:[#allocation4 + $0xa0] sm:$0xff] }
  0x1b   :  { %130 = vmatpush.msra.mxu1 %v70_v11  ;;  %v182_v45 = vld [vmem:[#allocation6 + $0x2] ss:$0 sm:$0xff] }
  0x1c   :  { %149 = vmatpush.msra.mxu2 %v89_v24 }
  0x1d   :  { %131 = vmatpush.msra.mxu1 %v69_v12 }
  0x1e   :  { %150 = vmatpush.msra.mxu2 %v88_v25 }
  0x1f   :  { %132 = vmatpush.msra.mxu1 %v68_v13 }
  0x20   :  { %151 = vmatpush.msra.mxu2 %v87_v26 }
  0x21   :  { %133 = vmatpush.msra.mxu1 %v67_v14 }
  0x22   :  { %152 = vmatpush.msra.mxu2 %v86_v27 }
  0x23   :  { %134 = vmatpush.msra.mxu1 %v66_v15 }
  0x24   :  { %153 = vmatpush.msra.mxu2 %v85_v28 }
  0x25   :  { %135 = vmatpush.msra.mxu1 %v65_v16 }
  0x26   :  { %154 = vmatpush.msra.mxu2 %v84_v29 }
  0x27   :  { %136 = vmatpush.msra.mxu1 %v64_v17 }
  0x28   :  { %155 = vmatpush.msra.mxu2 %v83_v30 }
  0x29   :  { %137 = vmatpush.msra.mxu1 %v63_v18 }
  0x2a   :  { %156 = vmatpush.msra.mxu2 %v82_v31 }
  0x2b   :  { %138 = vmatpush.msra.mxu1 %v62_v19 }
  0x2c   :  { %157 = vmatpush.msra.mxu2 %v81_v32 }
  0x2d   :  { %139 = vmatpush.msra.mxu1 %v61_v20 }
  0x2e   :  { %158 = vmatpush.msra.mxu2 %v80_v33 }
  0x30   :  { %159 = vmatpush.msra.mxu2 %v79_v38 }
  0x32   :  { %160 = vmatpush.msra.mxu2 %v78_v39 }
  0x34   :  { %161 = vmatpush.msra.mxu2 %v77_v40 }
  0x92   :  { %v119_v35 = vpop.f32.mrf.mxu0 }
  0x93   :  { %v120_v36 = vadd.f32 %v180_v34, %v119_v35 }
  0x95   :  { %v122_v37 = vmax.f32 %v120_v36, 0.0 }
  0x97   :  { %140 = vmatmul.f32.vlgmr.msra.gmra.mxu1 %v122_v37 }
 0x114   :  { %v141_v42 = vpop.f32.mrf.mxu1 }
 0x115   :  { %v142_v43 = vadd.f32 %v181_v41, %v141_v42 }
 0x117   :  { %v144_v44 = vmax.f32 %v142_v43, 0.0 }
 0x119   :  { %162 = vmatmul.f32.vlgmr.msra.gmra.mxu2 %v144_v44 }
 0x19c   :  { %v163_v46 = vpop.f32.mrf.mxu2 }
 0x19d   :  { %v164_v47 = vadd.f32 %v182_v45, %v163_v46 }
 0x19f   :  { %183 = vtanh.f32 %v164_v47 }
 0x1a5   :  { %v184_v48 = vpop.eup %183 }
 0x1a6   :  { %167 = vst [vmem:[%s301_s3] sm:$0xff] %v184_v48 }
 0x1a7   :  { %172 = vsyncpa [#allocation3], 1 }
 0x1a8   :  { %173 = vsyncpa [#allocation5], 1 }

</bundles_post_ra>
